<compile_context>
chip_gen: v6e
topology: v6e:2x2x1
jax: 0.10.0
libtpu: 0.0.40
codegen_flags: <defaults>
</compile_context>

<pallas_src>
import functools

import jax
import jax.numpy as jnp
from jax import lax
from jax.experimental import pallas as pl
from jax.experimental.pallas import tpu as pltpu


# ----------------------------------------------------------------------------
# Fast path: small table resident in VMEM, gather as a one-hot MXU matmul.
# ----------------------------------------------------------------------------
def _embed_onehot_kernel(ids_ref, emb_ref, out_ref):
    # ids_ref : VMEM (tile_t, 1) int32  — this tile's token ids
    # emb_ref : VMEM (V, D)             — resident (constant index_map)
    # out_ref : VMEM (tile_t, D)
    tile_t = ids_ref.shape[0]
    vocab = emb_ref.shape[0]
    ids = ids_ref[...]                                              # (tile_t, 1)
    vocab_iota = lax.broadcasted_iota(jnp.int32, (tile_t, vocab), 1)
    onehot = (ids == vocab_iota).astype(emb_ref.dtype)              # (tile_t, V)
    out_ref[...] = jnp.dot(
        onehot, emb_ref[...], preferred_element_type=jnp.float32
    ).astype(out_ref.dtype)


# ----------------------------------------------------------------------------
# Large-table path: per-row HBM DMA gather, n_slots copies in flight.
# ----------------------------------------------------------------------------
def _embed_dma_kernel(ids_ref, emb_hbm, out_ref, sem, *, tile_t, n_slots):
    # ids_ref : SMEM (tile_t,) int32    — this tile's token ids
    # emb_hbm : HBM  (V, D)             — embedding table, never copied to VMEM
    # out_ref : VMEM (tile_t, D)        — output tile for this grid step
    # sem     : DMA semaphores, shape (n_slots,)

    def row_copy(t, slot, tok):
        # One (1, D) table row gathered straight into the output tile.
        return pltpu.make_async_copy(
            emb_hbm.at[pl.ds(tok, 1), :],
            out_ref.at[pl.ds(t, 1), :],
            sem.at[slot])

    n_prime = min(n_slots, tile_t)

    # Prime the pipeline: n_prime row gathers in flight (static Python loop).
    for t in range(n_prime):
        row_copy(t, t % n_slots, ids_ref[t]).start()

    steady = tile_t - n_prime

    if steady > 0:
        def body(t, carry):
            slot = t % n_slots
            # Read both SMEM ids BEFORE the wait (keeps sst->sld forwarding).
            tok_cur = ids_ref[t]
            tok_next = ids_ref[t + n_prime]
            row_copy(t, slot, tok_cur).wait()          # row t is now in VMEM
            row_copy(t + n_prime, slot, tok_next).start()
            return carry

        # Guard-free steady state; unrolled so the LLO scheduler can pack the
        # scalar DMA issue work into fewer bundles.
        lax.fori_loop(0, steady, body, 0, unroll=min(n_slots, steady))

    # Drain the last n_prime rows (static trip count).
    for i in range(n_prime):
        t = steady + i
        row_copy(t, t % n_slots, ids_ref[t]).wait()


# ----------------------------------------------------------------------------
# Wrapper
# ----------------------------------------------------------------------------
def token_embedding(x, emb_table, *, tile_t=512, n_slots=16,
                    small_table_max_bytes=4 * 1024 * 1024,
                    out_block_budget_bytes=8 * 1024 * 1024):
    """x: (B, S) int token ids; emb_table: (V, D) -> (B, S, D) gather."""
    B, S = x.shape
    V, D = emb_table.shape
    T = B * S
    itemsize = jnp.dtype(emb_table.dtype).itemsize

    # Tile size: multiple of 8 (sublane), capped so the double-buffered output
    # block stays within a generation-safe VMEM budget (v7x: 64 MiB physical,
    # 32 MiB scoped default), and clamped for tiny inputs (single full tile).
    tile_t = max(8, (tile_t // 8) * 8)
    vmem_rows = max(8, (out_block_budget_bytes // (2 * D * itemsize)) // 8 * 8)
    tile_t = min(tile_t, vmem_rows)
    tile_t = min(tile_t, pl.cdiv(T, 8) * 8)
    n_tiles = pl.cdiv(T, tile_t)
    T_pad = n_tiles * tile_t

    # Out-of-range ids are clamped to [0, V-1] (torch.nn.Embedding would raise,
    # documented divergence); padded tail tokens gather row 0, sliced off below.
    ids = jnp.clip(x.reshape(-1).astype(jnp.int32), 0, V - 1)
    if T_pad != T:
        ids = jnp.pad(ids, (0, T_pad - T))

    grid = (n_tiles,)
    out_shape = jax.ShapeDtypeStruct((T_pad, D), emb_table.dtype)
    # Tiles are fully independent -> parallel grid axis (2 TCs on v7x).
    cparams = pltpu.CompilerParams(dimension_semantics=("parallel",))

    if V * D * itemsize <= small_table_max_bytes:
        # Small table: keep it resident in VMEM; gather = one-hot MXU matmul.
        out_flat = pl.pallas_call(
            _embed_onehot_kernel,
            out_shape=out_shape,
            grid=grid,
            in_specs=[
                pl.BlockSpec((tile_t, 1), lambda i: (i, 0)),   # this tile's ids
                pl.BlockSpec((V, D), lambda i: (0, 0)),        # resident table
            ],
            out_specs=pl.BlockSpec((tile_t, D), lambda i: (i, 0)),
            compiler_params=cparams,
        )(ids.reshape(T_pad, 1), emb_table)
    else:
        # Large table: HBM row gather with n_slots DMAs in flight.
        n_slots = max(1, min(n_slots, tile_t))
        kernel = functools.partial(_embed_dma_kernel,
                                   tile_t=tile_t, n_slots=n_slots)
        out_flat = pl.pallas_call(
            kernel,
            out_shape=out_shape,
            grid=grid,
            in_specs=[
                # Per-tile ids block in SMEM: footprint 4*tile_t bytes
                # regardless of sequence length (no whole-seq scalar prefetch).
                pl.BlockSpec((tile_t,), lambda i: (i,),
                             memory_space=pltpu.SMEM),
                pl.BlockSpec(memory_space=pl.ANY),             # table stays in HBM
            ],
            out_specs=pl.BlockSpec((tile_t, D), lambda i: (i, 0)),
            scratch_shapes=[pltpu.SemaphoreType.DMA((n_slots,))],
            compiler_params=cparams,
        )(ids, emb_table)

    out = out_flat if T_pad == T else out_flat[:T]
    return out.reshape(B, S, D)


if __name__ == "__main__":
    # Small shapes consistent with the module: batch=2, seq=8, vocab=64, d_model=128.
    B, S, V, D = 2, 8, 64, 128
    key = jax.random.PRNGKey(0)
    k_ids, k_emb = jax.random.split(key)

    x = jax.random.randint(k_ids, (B, S), 0, V, dtype=jnp.int32)
    # nn.Embedding default init: weight ~ N(0, 1)
    emb_table = jax.random.normal(k_emb, (V, D), dtype=jnp.float32)

    ref = emb_table[x]   # plain JAX gather == torch embedding lookup

    # Path 1 (default for this table size): VMEM-resident table, MXU one-hot gather.
    out = jax.block_until_ready(token_embedding(x, emb_table))
    assert out.shape == (B, S, D)
    assert jnp.allclose(out, ref), "fast path mismatch vs reference gather"

    # Path 2: large-table HBM DMA row gather, forced on the same inputs
    # (small n_slots so the steady-state wait/start loop is exercised too).
    out_dma = jax.block_until_ready(
        token_embedding(x, emb_table, n_slots=4, small_table_max_bytes=0))
    assert out_dma.shape == (B, S, D)
    assert jnp.allclose(out_dma, ref), "DMA path mismatch vs reference gather"

    print("KERNEL_OK")
</pallas_src>

<mosaic_0001>
module attributes {stable_mosaic.version = 11 : i64} {
  func.func @_embed_onehot_kernel(%arg0: i32, %arg1: memref<16x1xi32, #tpu.memory_space<vmem>>, %arg2: memref<64x128xf32, #tpu.memory_space<vmem>>, %arg3: memref<16x128xf32, #tpu.memory_space<vmem>>) attributes {dimension_semantics = [#tpu.dimension_semantics<parallel>], iteration_bounds = array<i64: 1>, scalar_prefetch = 0 : i64, scratch_operands = 0 : i64, tpu.core_type = #tpu.core_type<tc>, window_params = [{transform_indices = @transform_0, window_bounds = array<i64: 16, 1>}, {pipeline_mode = #tpu.pipeline_mode<synchronous>, transform_indices = @transform_1, window_bounds = array<i64: 64, 128>}, {transform_indices = @transform_2, window_bounds = array<i64: 16, 128>}]} {
    %c0 = arith.constant 0 : index
    %c0_0 = arith.constant 0 : index
    %0 = vector.load %arg1[%c0, %c0_0] : memref<16x1xi32, #tpu.memory_space<vmem>>, vector<16x1xi32>
    %1 = tpu.iota {dimensions = array<i32: 1>} : vector<16x64xi32>
    %2 = vector.broadcast %0 : vector<16x1xi32> to vector<16x64xi32>
    %3 = arith.cmpi eq, %2, %1 : vector<16x64xi32>
    %4 = arith.extui %3 : vector<16x64xi1> to vector<16x64xi32>
    %5 = arith.sitofp %4 : vector<16x64xi32> to vector<16x64xf32>
    %c0_1 = arith.constant 0 : index
    %c0_2 = arith.constant 0 : index
    %6 = vector.load %arg2[%c0_1, %c0_2] : memref<64x128xf32, #tpu.memory_space<vmem>>, vector<64x128xf32>
    %cst = arith.constant dense<0.000000e+00> : vector<16x128xf32>
    %7 = tpu.matmul %5, %6, %cst {dimension_numbers = #tpu.dot_dimension_numbers<[1], [0], [0], [1], [0, 0, 1, 1], [], []>} : vector<16x64xf32>, vector<64x128xf32>, vector<16x128xf32> -> vector<16x128xf32>
    %c0_3 = arith.constant 0 : index
    %c0_4 = arith.constant 0 : index
    %8 = vector.load %arg3[%c0_3, %c0_4] : memref<16x128xf32, #tpu.memory_space<vmem>>, vector<16x128xf32>
    tpu.vector_store %arg3[%c0_3, %c0_4], %7 {strides = array<i32>} : memref<16x128xf32, #tpu.memory_space<vmem>>, vector<16x128xf32>,
    return
  }
  func.func @transform_0(%arg0: i32) -> (i32, i32) {
    %c0_i32 = arith.constant 0 : i32
    %c0_i32_0 = arith.constant 0 : i32
    return %arg0, %c0_i32 : i32, i32
  }
  func.func @transform_1(%arg0: i32) -> (i32, i32) {
    %c0_i32 = arith.constant 0 : i32
    %c0_i32_0 = arith.constant 0 : i32
    %c0_i32_1 = arith.constant 0 : i32
    return %c0_i32, %c0_i32_0 : i32, i32
  }
  func.func @transform_2(%arg0: i32) -> (i32, i32) {
    %c0_i32 = arith.constant 0 : i32
    %c0_i32_0 = arith.constant 0 : i32
    return %arg0, %c0_i32 : i32, i32
  }
}

</mosaic_0001>

<bundles_post_ra>
// kernel: tpu_custom_call.1
= control target key start
LH: loop header
LB: loop body
LE: loop exit
PB: predicated region body
PF: predicated region fallthrough
CT: control target
= control target key end

     0   :  { %7 = vsyncpa [#allocation3], 0  ;;  %s274_s0 = inlined_call_operand.vmem [shape: s32[16,1], index: 0, kind: input, shape index: {}]   ;;  %s275_s1 = inlined_call_operand.hbm [shape: f32[64,128], index: 1, kind: input, shape index: {}]   ;;  %s276_s2 = inlined_call_operand.hbm [shape: f32[16,128], index: 2, kind: output, shape index: {}]  }
   0x1   :  { %8 = vsyncpa [#allocation4], 0  ;;  %s235_s9 = smov [#allocation2]  }
   0x2   :  { %s16_s10 = sshll.u32 %s235_s9, 4  ;;  %s17_s10 = int_to_ptr.vmem [resolvable:$true] %s16_s10 }
   0x3   :  { %s199_s11 = scalar_lea.vmem %s17_s10, 1024  ;;  %p204_p1 = scmp.lt.s32.totalorder %s17_s10, %s17_s10 }
   0x4   :  { %p200_p0 = scmp.ne.s32.totalorder %s17_s10, %s199_s11  ;;  %p205_p2 = scmp.lt.s32.totalorder %s199_s11, %s199_s11 }
   0x6   :  { %p206_p3 = por %p205_p2, %p204_p1 }
   0x8   :  { %p207_p4 = pnand %p206_p3, %p200_p0 }
   0xa   :  { %210 = shalt.err (!%p207_p4)
}
   0xb   :  { %s236_s12 = smov 128   ;;  %s237_s13 = smov 8  }
   0xc   :  { %22 = dma.hbm_to_vmem [thread:$0]  %s275_s1, 1024, %s17_s10, [#allocation3], %s236_s12, %s236_s12, %s237_s13  }
   0xd   :  { %231 = dma.done.wait [#allocation3], 1024  }
   0xe   :  { %232 = vsyncadd [#allocation3], 4294966272  ;;  %v238_v0 = vmov 0   ;;  %v26_v1 = vld [vmem:[%s274_s0] sm:$0xff]  ;;  %v49_v2 = vld [vmem:[#allocation2 + $0x38] sm:$0xff]  ;;  %v28_v11 = vlaneseq  ;;  %vm50_vm0 = vcmask 523264  }
   0xf   :  { %190 = vset.pattern.permute.xlu0 %v238_v0  ;;  %165 = vmatprep.subr.mxu0 %v49_v2  ;;  %v48_v3 = vld [vmem:[#allocation2 + $0x30] sm:$0xff]  ;;  %v27_v4 = vld [vmem:[%s274_s0 + $0x8] sm:$0xff]  ;;  %v46_v6 = vld [vmem:[#allocation2 + $0x20] sm:$0xff]  ;;  %v239_v14 = vmov 0.0   ;;  %s240_s0 = smov [#allocation5]  }
  0x10   :  { %31 = vperm.xlu0 %190, %v26_v1   ;;  %166 = vmatpush3.msra.mxu0 %v49_v2  ;;  %v47_v5 = vld [vmem:[#allocation2 + $0x28] sm:$0xff]  ;;  %v45_v7 = vld [vmem:[#allocation2 + $0x18] sm:$0xff]  ;;  %v44_v8 = vld [vmem:[#allocation2 + $0x10] sm:$0xff]  ;;  %v29_v12 = vand.u32 127, %v28_v11  ;;  %s139_s1 = sshll.u32 %s240_s0, 4  ;;  %s140_s1 = int_to_ptr.vmem [resolvable:$true] %s139_s1 }
  0x11   :  { %167 = vmatprep.subr.mxu0 %v48_v3  ;;  %v43_v9 = vld [vmem:[#allocation2 + $0x8] sm:$0xff]  ;;  %v42_v10 = vld [vmem:[#allocation2] sm:$0xff]  ;;  %s211_s20 = scalar_lea.vmem %s140_s1, 256  ;;  %p216_p6 = scmp.lt.s32.totalorder %s140_s1, %s140_s1 }
  0x12   :  { %168 = vmatpush3.msra.mxu0 %v48_v3  ;;  %p212_p5 = scmp.ne.s32.totalorder %s140_s1, %s211_s20  ;;  %p217_p7 = scmp.lt.s32.totalorder %s211_s20, %s211_s20 }
  0x13   :  { %169 = vmatprep.subr.mxu0 %v47_v5 }
  0x14   :  { %34 = vperm.xlu0 %190, %v27_v4   ;;  %170 = vmatpush3.msra.mxu0 %v47_v5  ;;  %p218_p8 = por %p217_p7, %p216_p6 }
  0x15   :  { %171 = vmatprep.subr.mxu0 %v46_v6 }
  0x16   :  { %172 = vmatpush3.msra.mxu0 %v46_v6  ;;  %p219_p9 = pnand %p218_p8, %p212_p5 }
  0x17   :  { %173 = vmatprep.subr.mxu0 %v45_v7 }
  0x18   :  { %174 = vmatpush3.msra.mxu0 %v45_v7 }
  0x19   :  { %175 = vmatprep.subr.mxu0 %v44_v8 }
  0x1a   :  { %176 = vmatpush3.msra.mxu0 %v44_v8 }
  0x1b   :  { %177 = vmatprep.subr.mxu0 %v43_v9 }
  0x1c   :  { %178 = vmatpush3.msra.mxu0 %v43_v9 }
  0x1d   :  { %179 = vmatprep.subr.mxu0 %v42_v10 }
  0x1e   :  { %180 = vmatpush3.msra.mxu0 %v42_v10 }
  0x8b   :  { %v32_v13 = vpop.permute.xlu0 %31 }
  0x8c   :  { %vm36_vm1 = vcmp.eq.s32.totalorder %v32_v13, %v29_v12 }
  0x8d   :  { %v151_v15 = vsel %vm36_vm1, 1.0, %v239_v14 }
  0x8e   :  { %181 = vmatprep.mubr.msk.f32.mxu0 %vm50_vm0, %v151_v15 }
  0x8f   :  { %v35_v16 = vpop.permute.xlu0 %34 }
  0x90   :  { %vm37_vm2 = vcmp.eq.s32.totalorder %v35_v16, %v29_v12 }
  0x91   :  { %v152_v17 = vsel %vm37_vm2, 1.0, %v239_v14 }
  0x92   :  { %182 = vmatmul.mubr.msk.f32.vlgmr.msra.gmra.mxu0 %vm50_vm0, %v152_v17 }
 0x152   :  { %v183_v18 = vpop.f32.mrf.mxu0 }
 0x153   :  { %133 = vst [vmem:[#allocation5 + $0x8] sm:$0xff] %v183_v18 }
 0x154   :  { %v123_v19 = vpop.f32.mrf.mxu0 }
 0x155   :  { %132 = vst [vmem:[#allocation5] sm:$0xff] %v123_v19 }
 0x156   :  { %222 = shalt.err (!%p219_p9)
}
 0x157   :  { %145 = dma.vmem_to_hbm [thread:$0]  %s140_s1, 256, %s276_s2, [#allocation4], %s236_s12, %s236_s12, %s237_s13  }
 0x158   :  { %233 = dma.done.wait [#allocation4], 256  }
 0x159   :  { %234 = vsyncadd [#allocation4], 4294967040 }
 0x15a   :  { %149 = vsyncpa [#allocation3], 1 }
 0x15b   :  { %150 = vsyncpa [#allocation4], 1 }

</bundles_post_ra>
